<compile_context>
chip_gen: v7x
topology: tpu7x:2x2x1
jax: 0.10.0
libtpu: 0.0.40
codegen_flags: <defaults>
</compile_context>

<pallas_src>
import jax
import jax.numpy as jnp
from jax.experimental import pallas as pl
from jax.experimental.pallas import tpu as pltpu


# ---------------- small utilities ----------------

def _round_up(x, m):
    return ((x + m - 1) // m) * m


def _device_vmem_bytes():
    try:
        return int(pltpu.get_tpu_info().vmem_capacity_bytes)
    except Exception:
        return 64 << 20  # conservative (v7x-sized) fallback


# ---------------- in-kernel helpers ----------------

def _masked_softmax(scores, s_valid, s_pad):
    """scores: (tB, S_pad) f32, lane-dense. Row softmax; padded columns masked."""
    if s_valid != s_pad:
        col = jax.lax.broadcasted_iota(jnp.int32, scores.shape, 1)
        scores = jnp.where(col < s_valid, scores, -1e30)
    m = jnp.max(scores, axis=-1, keepdims=True)
    p = jnp.exp(scores - m)
    inv = pl.reciprocal(jnp.sum(p, axis=-1, keepdims=True), approx=True)
    return p * inv


# ---------------- kernels ----------------

def _make_dot_kernel(s_valid, s_pad):
    """Shared kernel for 'dot' and (wrapper-hoisted) 'general'.

    h_ref : (tB, H)        f32   hidden, or hidden @ W for 'general'
    e_ref : (tB, H, S_pad)       encoder; H on the sublane axis, S on lanes
    out   : (tB, S_pad)    f32   row-softmaxed scores, lane-dense in S
    """
    def kernel(h_ref, e_ref, out_ref):
        h = h_ref[...].astype(jnp.float32)
        e = e_ref[...].astype(jnp.float32)
        # Contract over H (second-minor axis): VPU adds across H vregs plus one
        # in-vreg sublane reduce; the (tB, S) result is born lane-dense in S.
        scores = jnp.sum(e * h[:, :, None], axis=1)
        out_ref[...] = _masked_softmax(scores, s_valid, s_pad).astype(out_ref.dtype)
    return kernel


def _make_concat_kernel(s_valid, s_pad):
    """'concat' kernel.

    hp_ref  : (tB, H)        f32  hidden @ W[:, :H].T + b  (hoisted to wrapper)
    e_ref   : (tB, S_pad, H)      encoder (H on lanes for the MXU matmul)
    w2t_ref : (H, H)              W[:, H:].T (pre-transposed; optionally bf16)
    v_ref   : (1, H)         f32
    """
    def kernel(hp_ref, e_ref, w2t_ref, v_ref, out_ref):
        hp = hp_ref[...]
        e = e_ref[...]
        w2t = w2t_ref[...]
        v = v_ref[...]
        tb, sp, h = e.shape
        e2 = e.reshape(tb * sp, h)                       # free view: sp % 128 == 0
        e_proj = jnp.dot(e2.astype(w2t.dtype), w2t,
                         preferred_element_type=jnp.float32).reshape(tb, sp, h)
        energy = jnp.tanh(e_proj + hp[:, None, :])       # f32 elementwise (v5e-safe)
        scores = jnp.sum(energy * v[None, :, :], axis=-1)  # (tB, S_pad)
        out_ref[...] = _masked_softmax(scores, s_valid, s_pad).astype(out_ref.dtype)
    return kernel


# ---------------- tile selection ----------------

def _choose_block_b(B, method, s_pad, H, enc_itemsize, weight_bytes, vmem_cap):
    """Pick the batch tile and return (block_b, per_row_bytes).

    per_row_bytes counts one batch row's VMEM footprint for one grid step:
    double-buffered encoder + output streams, resident f32 intermediates
    (concat: e_proj + energy), and the double-buffered (tB, H) hidden row.
    """
    enc_row = s_pad * H * enc_itemsize
    out_row = s_pad * 4
    if method == 'concat':
        inter_row = 2 * s_pad * H * 4        # e_proj + energy (f32)
    else:
        inter_row = s_pad * 4                # f32 scores
    per_row = 2 * enc_row + 2 * out_row + inter_row + 2 * H * 4

    # Generation-aware soft budget: ~8 MiB (double-buffered -> 16 MiB) encoder
    # tiles are at the HBM-roofline sweet spot; halve on small-VMEM parts
    # (v7x: 64 MiB physical).  Weights are double-buffered even when constant.
    soft = (16 << 20) if vmem_cap <= (64 << 20) else (32 << 20)
    budget = min(int(vmem_cap * 0.7), soft) - 2 * weight_bytes - (2 << 20)
    budget = max(budget, per_row * 8)        # never below an 8-row tile

    b_pad8 = _round_up(max(B, 1), 8)
    block_b = max(8, min(b_pad8, (budget // per_row) // 8 * 8))

    # Keep >= 2 grid steps when the batch allows it: feeds both TensorCores on
    # v7x and lets the DMA/compute pipeline overlap on single-core parts.
    if b_pad8 >= 16 and block_b >= b_pad8:
        block_b = _round_up(b_pad8 // 2, 8)
    return block_b, per_row


# ---------------- wrapper ----------------

def attn_forward(method, hidden, encoder_outputs, params=None, *,
                 stream_dtype=None, mxu_dtype=None):
    """Pallas equivalent of Attn(method, H).forward(hidden, encoder_outputs).

    hidden: (1, B, H); encoder_outputs: (S, B, H).  Returns (B, 1, S) float32.
    stream_dtype: optionally stream the encoder in e.g. jnp.bfloat16 (halves
                  HBM bytes on the mem-bound dot/general paths; accumulation
                  stays f32 in-kernel).
    mxu_dtype:    optionally cast the concat projection weight to e.g. bf16
                  (MXU-native on v6e/v7x; accumulation stays f32).
    """
    S, B, H = encoder_outputs.shape
    out_dtype = jnp.float32
    enc_dtype = stream_dtype if stream_dtype is not None else encoder_outputs.dtype
    enc_itemsize = jnp.dtype(enc_dtype).itemsize

    s_pad = _round_up(max(S, 1), 128)
    vmem_cap = _device_vmem_bytes()
    h2 = hidden.reshape(B, H).astype(jnp.float32)

    if method in ('dot', 'general'):
        if method == 'general':
            # scores[b,s] = enc[b,s,:] . (h @ W)[b,:] + (h . bias)[b].  The bias
            # term is constant across s, so it cancels under the row softmax.
            # Hoisting the projection to XLA removes the S-times-redundant
            # matmul AND all weight streams from the kernel.
            h2 = h2 @ params['W'].astype(jnp.float32)
        weight_bytes = 0
        block_b, per_row = _choose_block_b(B, method, s_pad, H, enc_itemsize,
                                           weight_bytes, vmem_cap)
        b_pad = _round_up(B, block_b)

        # (S, B, H) -> (B, H, S): H on the sublane axis, S on lanes.
        enc = jnp.transpose(encoder_outputs, (1, 2, 0)).astype(enc_dtype)
        enc = jnp.pad(enc, ((0, b_pad - B), (0, 0), (0, s_pad - S)))
        h_in = jnp.pad(h2, ((0, b_pad - B), (0, 0)))

        kernel = _make_dot_kernel(S, s_pad)
        args = (h_in, enc)
        in_specs = [pl.BlockSpec((block_b, H), lambda i: (i, 0)),
                    pl.BlockSpec((block_b, H, s_pad), lambda i: (i, 0, 0))]

    elif method == 'concat':
        W = params['W']                                      # (H, 2H) nn.Linear weight
        wdt = mxu_dtype if mxu_dtype is not None else jnp.float32
        w2t = W[:, H:].T.astype(wdt)                         # (H, H) encoder half
        # Hidden half + bias computed once wrapper-side (tiny (B,H)@(H,H)).
        h_proj = h2 @ W[:, :H].T.astype(jnp.float32) \
                 + params['b'].reshape(1, H).astype(jnp.float32)
        v2 = params['v'].reshape(1, H).astype(jnp.float32)
        weight_bytes = w2t.size * jnp.dtype(wdt).itemsize + v2.size * 4

        block_b, per_row = _choose_block_b(B, method, s_pad, H, enc_itemsize,
                                           weight_bytes, vmem_cap)
        b_pad = _round_up(B, block_b)

        enc = jnp.transpose(encoder_outputs, (1, 0, 2)).astype(enc_dtype)  # (B, S, H)
        enc = jnp.pad(enc, ((0, b_pad - B), (0, s_pad - S), (0, 0)))
        h_proj = jnp.pad(h_proj, ((0, b_pad - B), (0, 0)))

        kernel = _make_concat_kernel(S, s_pad)
        args = (h_proj, enc, w2t, v2)
        in_specs = [pl.BlockSpec((block_b, H), lambda i: (i, 0)),
                    pl.BlockSpec((block_b, s_pad, H), lambda i: (i, 0, 0)),
                    pl.BlockSpec((H, H), lambda i: (0, 0)),
                    pl.BlockSpec((1, H), lambda i: (0, 0))]
    else:
        raise ValueError(method, 'is not an appropriate attention method.')

    grid = (b_pad // block_b,)
    out_spec = pl.BlockSpec((block_b, s_pad), lambda i: (i, 0))

    # VMEM budget (inputs/outputs double-buffered, weights double-buffered,
    # f32 intermediates counted); limit clamped to the device's capacity.
    needed = block_b * per_row + 2 * weight_bytes + (2 << 20)
    cp_kwargs = dict(dimension_semantics=("parallel",))
    if needed > (12 << 20):  # above v5e's 16 MiB default scoped VMEM (w/ margin)
        cp_kwargs["vmem_limit_bytes"] = int(min(max(needed + (8 << 20), 32 << 20),
                                                int(vmem_cap * 0.85)))

    out2 = pl.pallas_call(
        kernel,
        out_shape=jax.ShapeDtypeStruct((b_pad, s_pad), out_dtype),
        grid=grid,
        in_specs=in_specs,
        out_specs=out_spec,
        compiler_params=pltpu.CompilerParams(**cp_kwargs),
    )(*args)

    # Slice off the B/S padding; unsqueeze(1) is free metadata in XLA.
    return out2[:B, :S][:, None, :]


# ---------------- pure-JAX reference (sanity check) ----------------

def ref_forward(method, hidden, enc, params=None):
    if method == 'dot':
        scores = jnp.sum(hidden * enc, axis=2)
    elif method == 'general':
        energy = enc @ params['W'].T + params['b']
        scores = jnp.sum(hidden * energy, axis=2)
    elif method == 'concat':
        cat = jnp.concatenate([jnp.broadcast_to(hidden, enc.shape), enc], axis=2)
        energy = jnp.tanh(cat @ params['W'].T + params['b'])
        scores = jnp.sum(params['v'] * energy, axis=2)
    at = scores.T
    return jax.nn.softmax(at, axis=1)[:, None, :]


if __name__ == "__main__":
    B, S, H = 2, 8, 32   # (1, batch, hidden) / (seq, batch, hidden)

    key = jax.random.PRNGKey(0)
    k_h, k_e, k_wg, k_bg, k_wc, k_bc, k_v = jax.random.split(key, 7)

    hidden = jax.random.normal(k_h, (1, B, H), dtype=jnp.float32)
    encoder_outputs = jax.random.normal(k_e, (S, B, H), dtype=jnp.float32)

    params_general = {
        'W': jax.random.normal(k_wg, (H, H), dtype=jnp.float32) * 0.1,
        'b': jax.random.normal(k_bg, (H,), dtype=jnp.float32) * 0.1,
    }
    params_concat = {
        'W': jax.random.normal(k_wc, (H, 2 * H), dtype=jnp.float32) * 0.1,
        'b': jax.random.normal(k_bc, (H,), dtype=jnp.float32) * 0.1,
        'v': jax.random.normal(k_v, (H,), dtype=jnp.float32) * 0.1,
    }

    configs = [
        ('dot', None),
        ('general', params_general),
        ('concat', params_concat),
    ]

    # f32 path: tight check against the pure-JAX reference (tolerance covers
    # the approx EUP reciprocal and the algebraically-reassociated 'general').
    for method, params in configs:
        out = jax.block_until_ready(attn_forward(method, hidden, encoder_outputs, params))
        assert out.shape == (B, 1, S), out.shape
        ref = ref_forward(method, hidden, encoder_outputs, params)
        assert jnp.allclose(out, ref, atol=2e-3, rtol=2e-3), f"mismatch for method={method}"

    # bf16-streaming path (halves HBM bytes on the mem-bound dot/general paths,
    # bf16-native MXU weights for concat): checked for shape / finiteness / a
    # valid probability distribution at bf16-level precision.
    for method, params in configs:
        out = jax.block_until_ready(
            attn_forward(method, hidden, encoder_outputs, params,
                         stream_dtype=jnp.bfloat16, mxu_dtype=jnp.bfloat16))
        assert out.shape == (B, 1, S), out.shape
        assert bool(jnp.all(jnp.isfinite(out))), f"non-finite output for method={method}"
        assert jnp.allclose(jnp.sum(out, axis=-1), 1.0, atol=1e-2), \
            f"softmax rows do not sum to 1 for method={method}"

    print("KERNEL_OK")
</pallas_src>

<mosaic_0001>
module attributes {stable_mosaic.version = 11 : i64} {
  func.func @kernel(%arg0: i32, %arg1: memref<8x32xf32, #tpu.memory_space<vmem>>, %arg2: memref<8x32x128xf32, #tpu.memory_space<vmem>>, %arg3: memref<8x128xf32, #tpu.memory_space<vmem>>) attributes {dimension_semantics = [#tpu.dimension_semantics<parallel>], iteration_bounds = array<i64: 1>, scalar_prefetch = 0 : i64, scratch_operands = 0 : i64, tpu.core_type = #tpu.core_type<tc>, window_params = [{transform_indices = @transform_0, window_bounds = array<i64: 8, 32>}, {transform_indices = @transform_1, window_bounds = array<i64: 8, 32, 128>}, {transform_indices = @transform_2, window_bounds = array<i64: 8, 128>}]} {
    %c0 = arith.constant 0 : index
    %c0_0 = arith.constant 0 : index
    %0 = vector.load %arg1[%c0, %c0_0] : memref<8x32xf32, #tpu.memory_space<vmem>>, vector<8x32xf32>
    %c0_1 = arith.constant 0 : index
    %c0_2 = arith.constant 0 : index
    %c0_3 = arith.constant 0 : index
    %1 = vector.load %arg2[%c0_1, %c0_2, %c0_3] : memref<8x32x128xf32, #tpu.memory_space<vmem>>, vector<8x32x128xf32>
    %2 = vector.shape_cast %0 : vector<8x32xf32> to vector<8x32x1xf32>
    %3 = vector.broadcast %2 : vector<8x32x1xf32> to vector<8x32x128xf32>
    %4 = arith.mulf %1, %3 : vector<8x32x128xf32>
    %cst = arith.constant dense<0.000000e+00> : vector<8x128xf32>
    %5 = vector.multi_reduction <add>, %4, %cst [1] : vector<8x32x128xf32> to vector<8x128xf32>
    %6 = tpu.iota {dimensions = array<i32: 1>} : vector<8x128xi32>
    %c8_i32 = arith.constant 8 : i32
    %7 = vector.broadcast %c8_i32 : i32 to vector<8x128xi32>
    %8 = arith.cmpi slt, %6, %7 : vector<8x128xi32>
    %cst_4 = arith.constant -1.000000e+30 : f32
    %9 = vector.broadcast %cst_4 : f32 to vector<8x128xf32>
    %10 = arith.select %8, %5, %9 : vector<8x128xi1>, vector<8x128xf32>
    %cst_5 = arith.constant dense<0xFF800000> : vector<8xf32>
    %11 = vector.multi_reduction <maximumf>, %10, %cst_5 [1] : vector<8x128xf32> to vector<8xf32>
    %12 = vector.shape_cast %11 : vector<8xf32> to vector<8x1xf32>
    %13 = vector.broadcast %12 : vector<8x1xf32> to vector<8x128xf32>
    %14 = arith.subf %10, %13 : vector<8x128xf32>
    %15 = math.exp %14 : vector<8x128xf32>
    %cst_6 = arith.constant dense<0.000000e+00> : vector<8xf32>
    %16 = vector.multi_reduction <add>, %15, %cst_6 [1] : vector<8x128xf32> to vector<8xf32>
    %17 = vector.shape_cast %16 : vector<8xf32> to vector<8x1xf32>
    %18 = tpu.reciprocal %17 {approx = true} : vector<8x1xf32> -> vector<8x1xf32>
    %19 = vector.broadcast %18 : vector<8x1xf32> to vector<8x128xf32>
    %20 = arith.mulf %15, %19 : vector<8x128xf32>
    %c0_7 = arith.constant 0 : index
    %c0_8 = arith.constant 0 : index
    %21 = vector.load %arg3[%c0_7, %c0_8] : memref<8x128xf32, #tpu.memory_space<vmem>>, vector<8x128xf32>
    tpu.vector_store %arg3[%c0_7, %c0_8], %20 {strides = array<i32>} : memref<8x128xf32, #tpu.memory_space<vmem>>, vector<8x128xf32>,
    return
  }
  func.func @transform_0(%arg0: i32) -> (i32, i32) {
    %c0_i32 = arith.constant 0 : i32
    %c0_i32_0 = arith.constant 0 : i32
    return %arg0, %c0_i32 : i32, i32
  }
  func.func @transform_1(%arg0: i32) -> (i32, i32, i32) {
    %c0_i32 = arith.constant 0 : i32
    %c0_i32_0 = arith.constant 0 : i32
    %c0_i32_1 = arith.constant 0 : i32
    return %arg0, %c0_i32, %c0_i32_0 : i32, i32, i32
  }
  func.func @transform_2(%arg0: i32) -> (i32, i32) {
    %c0_i32 = arith.constant 0 : i32
    %c0_i32_0 = arith.constant 0 : i32
    return %arg0, %c0_i32 : i32, i32
  }
}

</mosaic_0001>

<bundles_post_ra>
// kernel: tpu_custom_call.1
= control target key start
LH: loop header
LB: loop body
LE: loop exit
PB: predicated region body
PF: predicated region fallthrough
CT: control target
= control target key end

     0   :  { %7 = vsyncpa [#allocation3], 0  ;;  %s535_s0 = inlined_call_operand.hbm [shape: f32[8,32], index: 0, kind: input, shape index: {}]   ;;  %s536_s1 = inlined_call_operand.hbm [shape: f32[8,32,128], index: 1, kind: input, shape index: {}]   ;;  %s537_s2 = inlined_call_operand.hbm [shape: f32[8,128], index: 2, kind: output, shape index: {}]  }
   0x1   :  { %8 = vsyncpa [#allocation6], 0 }
   0x2   :  { %9 = vsyncpa [#allocation4], 0  ;;  %s461_s9 = smov [#allocation2]   ;;  %s462_s11 = smov [#allocation5]  }
   0x3   :  { %s16_s10 = sshll.u32 %s461_s9, 4  ;;  %s25_s12 = sshll.u32 %s462_s11, 4  ;;  %s17_s10 = int_to_ptr.vmem [resolvable:$true] %s16_s10  ;;  %s481_s12 = int_to_ptr.vmem [resolvable:$true] %s25_s12 }
   0x4   :  { %s389_s15 = scalar_lea.hbm %s535_s0, 128 }
   0x5   :  { %p390_p0 = scmp.ne.s32.totalorder %s535_s0, %s389_s15  ;;  %p393_p1 = scmp.lt.u32.totalorder %s389_s15, %s535_s0 }
   0x7   :  { %p395_p2 = pnand %p393_p1, %p390_p0 }
   0x9   :  { %398 = shalt.err (!%p395_p2)
}
   0xa   :  { %s399_s20 = scalar_lea.vmem %s17_s10, 128  ;;  %p404_p4 = scmp.lt.s32.totalorder %s17_s10, %s17_s10 }
   0xb   :  { %p400_p3 = scmp.ne.s32.totalorder %s17_s10, %s399_s20  ;;  %p405_p5 = scmp.lt.s32.totalorder %s399_s20, %s399_s20 }
   0xd   :  { %p406_p6 = por %p405_p5, %p404_p4 }
   0xf   :  { %p407_p7 = pnand %p406_p6, %p400_p3 }
  0x11   :  { %410 = shalt.err (!%p407_p7)
}
  0x12   :  { %19 = dma.hbm_to_vmem [thread:$0]  %s535_s0, 128, %s17_s10, [#allocation3]  }
  0x13   :  { %s411_s25 = scalar_lea.hbm %s536_s1, 4096 }
  0x14   :  { %p412_p8 = scmp.ne.s32.totalorder %s536_s1, %s411_s25  ;;  %p415_p9 = scmp.lt.u32.totalorder %s411_s25, %s536_s1 }
  0x16   :  { %p417_p10 = pnand %p415_p9, %p412_p8 }
  0x18   :  { %420 = shalt.err (!%p417_p10)
}
  0x19   :  { %s421_s30 = scalar_lea.vmem %s481_s12, 4096  ;;  %p426_p12 = scmp.lt.s32.totalorder %s481_s12, %s481_s12 }
  0x1a   :  { %p422_p11 = scmp.ne.s32.totalorder %s481_s12, %s421_s30  ;;  %p427_p13 = scmp.lt.s32.totalorder %s421_s30, %s421_s30 }
  0x1c   :  { %p428_p0 = por %p427_p13, %p426_p12 }
  0x1e   :  { %p429_p1 = pnand %p428_p0, %p422_p11 }
  0x20   :  { %432 = shalt.err (!%p429_p1)
}
  0x21   :  { %s463_s0 = smov 128   ;;  %s464_s3 = smov 8  }
  0x22   :  { %31 = dma.hbm_to_vmem [thread:$0]  %s536_s1, 4096, %s481_s12, [#allocation6], %s463_s0, %s463_s0, %s464_s3  }
  0x23   :  { %455 = dma.done.wait [#allocation3], 128  }
  0x24   :  { %456 = vsyncadd [#allocation3], 4294967168 }
  0x25   :  { %457 = dma.done.wait [#allocation6], 4096  }
  0x26   :  { %458 = vsyncadd [#allocation6], 4294963200  ;;  %v71_v0 = vlaneseq  ;;  %v38_v4 = vld [vmem:[#allocation2] sm:$0xff]  ;;  %v44_v35 = vld [vmem:[#allocation5 + $0x28] sm:$0xff]  ;;  %vm338_vm0 = vcmask 1041409   ;;  %vm340_vm1 = vcmask 1042434  }
  0x27   :  { %v40_v36 = vld [vmem:[#allocation5 + $0x8] sm:$0xff]  ;;  %v47_v40 = vld [vmem:[#allocation5 + $0x40] sm:$0xff]  ;;  %v45_v45 = vld [vmem:[#allocation5 + $0x30] sm:$0xff]  ;;  %vm342_vm2 = vcmask 1043459   ;;  %vm344_vm3 = vcmask 1044484   ;;  %vm346_vm4 = vcmask 1045509  }
  0x28   :  { %v72_v1 = vshrl.u32 %v71_v0, 7  ;;  %v48_v39 = vld [vmem:[#allocation5 + $0x48] sm:$0xff]  ;;  %v43_v41 = vld [vmem:[#allocation5 + $0x20] sm:$0xff]  ;;  %v41_v46 = vld [vmem:[#allocation5 + $0x10] sm:$0xff]  ;;  %vm348_vm5 = vcmask 1046534   ;;  %vm350_vm6 = vcmask 1047559  }
  0x29   :  { %v39_v42 = vld [vmem:[#allocation5] sm:$0xff]  ;;  %v49_v47 = vld [vmem:[#allocation5 + $0x50] sm:$0xff]  ;;  %v52_v50 = vld [vmem:[#allocation5 + $0x68] sm:$0xff]  ;;  %s465_s1 = smov [#allocation7]  }
  0x2a   :  { %v92_v2 = vsub.s32 1, %v72_v1  ;;  %v73_v3 = vsub.s32 0, %v72_v1  ;;  %v111_v7 = vsub.s32 2, %v72_v1  ;;  %v130_v9 = vsub.s32 3, %v72_v1  ;;  %v51_v51 = vld [vmem:[#allocation5 + $0x60] sm:$0xff]  ;;  %v42_v56 = vld [vmem:[#allocation5 + $0x18] sm:$0xff] }
  0x2b   :  { %v149_v11 = vsub.s32 4, %v72_v1  ;;  %v168_v13 = vsub.s32 5, %v72_v1  ;;  %v187_v15 = vsub.s32 6, %v72_v1  ;;  %v206_v17 = vsub.s32 7, %v72_v1  ;;  %v46_v57 = vld [vmem:[#allocation5 + $0x38] sm:$0xff]  ;;  %v53_v62 = vld [vmem:[#allocation5 + $0x70] sm:$0xff] }
  0x2c   :  { %v93_v5 = vrot.slane %v38_v4, %v92_v2  ;;  %v74_v6 = vrot.slane %v38_v4, %v73_v3  ;;  %v112_v8 = vrot.slane %v38_v4, %v111_v7  ;;  %v131_v10 = vrot.slane %v38_v4, %v130_v9  ;;  %v50_v58 = vld [vmem:[#allocation5 + $0x58] sm:$0xff]  ;;  %s370_s6 = sshll.u32 %s465_s1, 4  ;;  %s371_s6 = int_to_ptr.vmem [resolvable:$true] %s370_s6 }
  0x2d   :  { %v150_v12 = vrot.slane %v38_v4, %v149_v11  ;;  %v169_v14 = vrot.slane %v38_v4, %v168_v13  ;;  %v188_v16 = vrot.slane %v38_v4, %v187_v15  ;;  %v207_v18 = vrot.slane %v38_v4, %v206_v17  ;;  %v56_v17 = vld [vmem:[#allocation5 + $0x88] sm:$0xff]  ;;  %s433_s7 = scalar_lea.vmem %s371_s6, 128  ;;  %p438_p3 = scmp.lt.s32.totalorder %s371_s6, %s371_s6 }
  0x2e   :  { %95 = vbcast.lane.b32.xlu1 %v93_v5, 256  ;;  %76 = vbcast.lane.b32.xlu0 %v74_v6, 256  ;;  %p434_p2 = scmp.ne.s32.totalorder %s371_s6, %s433_s7  ;;  %p439_p4 = scmp.lt.s32.totalorder %s433_s7, %s433_s7 }
  0x30   :  { %p440_p5 = por %p439_p4, %p438_p3 }
  0x32   :  { %99 = vbcast.lane.b32.xlu1 %v93_v5, 264  ;;  %80 = vbcast.lane.b32.xlu0 %v74_v6, 264  ;;  %p441_p6 = pnand %p440_p5, %p434_p2 }
  0x36   :  { %118 = vbcast.lane.b32.xlu1 %v112_v8, 264  ;;  %114 = vbcast.lane.b32.xlu0 %v112_v8, 256 }
  0x3a   :  { %103 = vbcast.lane.b32.xlu1 %v93_v5, 272  ;;  %84 = vbcast.lane.b32.xlu0 %v74_v6, 272 }
  0x3e   :  { %137 = vbcast.lane.b32.xlu1 %v131_v10, 264  ;;  %133 = vbcast.lane.b32.xlu0 %v131_v10, 256 }
  0x42   :  { %152 = vbcast.lane.b32.xlu1 %v150_v12, 256  ;;  %122 = vbcast.lane.b32.xlu0 %v112_v8, 272 }
  0x46   :  { %88 = vbcast.lane.b32.xlu1 %v74_v6, 280  ;;  %156 = vbcast.lane.b32.xlu0 %v150_v12, 264 }
  0x4a   :  { %141 = vbcast.lane.b32.xlu1 %v131_v10, 272  ;;  %107 = vbcast.lane.b32.xlu0 %v93_v5, 280 }
  0x4e   :  { %175 = vbcast.lane.b32.xlu1 %v169_v14, 264  ;;  %171 = vbcast.lane.b32.xlu0 %v169_v14, 256 }
  0x52   :  { %160 = vbcast.lane.b32.xlu1 %v150_v12, 272  ;;  %126 = vbcast.lane.b32.xlu0 %v112_v8, 280 }
  0x56   :  { %194 = vbcast.lane.b32.xlu1 %v188_v16, 264  ;;  %190 = vbcast.lane.b32.xlu0 %v188_v16, 256 }
  0x5a   :  { %179 = vbcast.lane.b32.xlu1 %v169_v14, 272  ;;  %145 = vbcast.lane.b32.xlu0 %v131_v10, 280 }
  0x5e   :  { %213 = vbcast.lane.b32.xlu1 %v207_v18, 264  ;;  %209 = vbcast.lane.b32.xlu0 %v207_v18, 256 }
  0x62   :  { %198 = vbcast.lane.b32.xlu1 %v188_v16, 272  ;;  %164 = vbcast.lane.b32.xlu0 %v150_v12, 280 }
  0x66   :  { %217 = vbcast.lane.b32.xlu1 %v207_v18, 272  ;;  %183 = vbcast.lane.b32.xlu0 %v169_v14, 280  ;;  %v54_v14 = vld [vmem:[#allocation5 + $0x78] sm:$0xff] }
  0x6a   :  { %221 = vbcast.lane.b32.xlu1 %v207_v18, 280  ;;  %202 = vbcast.lane.b32.xlu0 %v188_v16, 280 }
  0xa0   :  { %v96_v19 = vpop.permute.xlu1 %95  ;;  %v77_v20 = vpop.permute.xlu0 %76 }
  0xa1   :  { %v227_v54 = vmul.f32 %v96_v19, %v43_v41  ;;  %v223_v55 = vmul.f32 %v77_v20, %v39_v42  ;;  %v64_v41 = vld [vmem:[#allocation5 + $0xc8] sm:$0xff]  ;;  %v61_v42 = vld [vmem:[#allocation5 + $0xb0] sm:$0xff] }
  0xa4   :  { %v100_v21 = vpop.permute.xlu1 %99  ;;  %v81_v22 = vpop.permute.xlu0 %80 }
  0xa5   :  { %v228_v43 = vmul.f32 %v100_v21, %v44_v35  ;;  %v224_v44 = vmul.f32 %v81_v22, %v40_v36 }
  0xa7   :  { %v264_v63 = vadd.f32 %v228_v43, %v227_v54  ;;  %v255_v1 = vadd.f32 %v224_v44, %v223_v55  ;;  %v58_v44 = vld [vmem:[#allocation5 + $0x98] sm:$0xff] }
  0xa8   :  { %v119_v23 = vpop.permute.xlu1 %118  ;;  %v115_v24 = vpop.permute.xlu0 %114 }
  0xa9   :  { %v232_v48 = vmul.f32 %v119_v23, %v48_v39  ;;  %v231_v49 = vmul.f32 %v115_v24, %v47_v40  ;;  %v55_v24 = vld [vmem:[#allocation5 + $0x80] sm:$0xff] }
  0xab   :  { %v273_v4 = vadd.f32 %v232_v48, %v231_v49  ;;  %v68_v48 = vld [vmem:[#allocation5 + $0xe8] sm:$0xff]  ;;  %v67_v49 = vld [vmem:[#allocation5 + $0xe0] sm:$0xff] }
  0xac   :  { %v104_v25 = vpop.permute.xlu1 %103  ;;  %v85_v26 = vpop.permute.xlu0 %84 }
  0xad   :  { %v229_v59 = vmul.f32 %v104_v25, %v45_v45  ;;  %v225_v60 = vmul.f32 %v85_v26, %v41_v46  ;;  %v57_v25 = vld [vmem:[#allocation5 + $0x90] sm:$0xff] }
  0xaf   :  { %v265_v11 = vadd.f32 %v264_v63, %v229_v59  ;;  %v256_v12 = vadd.f32 %v255_v1, %v225_v60  ;;  %v62_v63 = vld [vmem:[#allocation5 + $0xb8] sm:$0xff] }
  0xb0   :  { %v138_v27 = vpop.permute.xlu1 %137  ;;  %v134_v28 = vpop.permute.xlu0 %133 }
  0xb1   :  { %v236_v2 = vmul.f32 %v138_v27, %v52_v50  ;;  %v235_v3 = vmul.f32 %v134_v28, %v51_v51 }
  0xb3   :  { %v282_v15 = vadd.f32 %v236_v2, %v235_v3 }
  0xb4   :  { %v513_v29 = vpop.permute.xlu1 %152  ;;  %v123_v30 = vpop.permute.xlu0 %122 }
  0xb5   :  { %v233_v61 = vmul.f32 %v123_v30, %v49_v47  ;;  %v239_v39 = vmul.f32 %v513_v29, %v55_v24  ;;  %v63_v47 = vld [vmem:[#allocation5 + $0xc0] sm:$0xff] }
  0xb7   :  { %v274_v13 = vadd.f32 %v273_v4, %v233_v61 }
  0xb8   :  { %v89_v31 = vpop.permute.xlu1 %88  ;;  %v157_v32 = vpop.permute.xlu0 %156 }
  0xb9   :  { %v226_v5 = vmul.f32 %v89_v31, %v42_v56  ;;  %v240_v26 = vmul.f32 %v157_v32, %v56_v17  ;;  %v60_v31 = vld [vmem:[#allocation5 + $0xa8] sm:$0xff] }
  0xbb   :  { %v257_v16 = vadd.f32 %v256_v12, %v226_v5  ;;  %v291_v45 = vadd.f32 %v240_v26, %v239_v39 }
  0xbc   :  { %v142_v33 = vpop.permute.xlu1 %141  ;;  %v108_v34 = vpop.permute.xlu0 %107 }
  0xbd   :  { %v230_v6 = vmul.f32 %v108_v34, %v46_v57  ;;  %v237_v10 = vmul.f32 %v142_v33, %v53_v62  ;;  %v258_v28 = vrot.slane %v257_v16, 4  ;;  %v59_v33 = vld [vmem:[#allocation5 + $0xa0] sm:$0xff]  ;;  %v65_v57 = vld [vmem:[#allocation5 + $0xd0] sm:$0xff] }
  0xbf   :  { %v266_v18 = vadd.f32 %v265_v11, %v230_v6  ;;  %v283_v22 = vadd.f32 %v282_v15, %v237_v10  ;;  %v259_v50 = vadd.f32 %v258_v28, %v257_v16  ;;  %v70_v15 = vld [vmem:[#allocation5 + $0xf8] sm:$0xff] }
  0xc0   :  { %v515_v37 = vpop.permute.xlu1 %175  ;;  %v517_v38 = vpop.permute.xlu0 %171  ;;  %v66_v16 = vld [vmem:[#allocation5 + $0xd8] sm:$0xff] }
  0xc1   :  { %v267_v30 = vrot.slane %v266_v18, 4  ;;  %v244_v46 = vmul.f32 %v515_v37, %v60_v31  ;;  %v243_v32 = vmul.f32 %v517_v38, %v59_v33  ;;  %v69_v37 = vld [vmem:[#allocation5 + $0xf0] sm:$0xff]  ;;  %v260_v12 = vrot.slane %v259_v50, 2 }
  0xc3   :  { %v268_v51 = vadd.f32 %v267_v30, %v266_v18  ;;  %v300_v38 = vadd.f32 %v244_v46, %v243_v32  ;;  %v261_v30 = vadd.f32 %v260_v12, %v259_v50 }
  0xc4   :  { %v161_v52 = vpop.permute.xlu1 %160  ;;  %v127_v53 = vpop.permute.xlu0 %126 }
  0xc5   :  { %v234_v7 = vmul.f32 %v127_v53, %v50_v58  ;;  %v241_v40 = vmul.f32 %v161_v52, %v57_v25  ;;  %v269_v2 = vrot.slane %v268_v51, 2 }
  0xc7   :  { %v275_v19 = vadd.f32 %v274_v13, %v234_v7  ;;  %v292_v56 = vadd.f32 %v291_v45, %v241_v40 }
  0xc8   :  { %v195_v8 = vpop.permute.xlu1 %194  ;;  %v191_v9 = vpop.permute.xlu0 %190 }
  0xc9   :  { %v276_v34 = vrot.slane %v275_v19, 4  ;;  %v248_v29 = vmul.f32 %v195_v8, %v64_v41  ;;  %v247_v59 = vmul.f32 %v191_v9, %v63_v47 }
  0xcb   :  { %v277_v53 = vadd.f32 %v276_v34, %v275_v19  ;;  %v309_v13 = vadd.f32 %v248_v29, %v247_v59  ;;  %v270_v19 = vadd.f32 %v269_v2, %v268_v51 }
  0xcc   :  { %v180_v20 = vpop.permute.xlu1 %179  ;;  %v146_v21 = vpop.permute.xlu0 %145 }
  0xcd   :  { %v238_v23 = vmul.f32 %v146_v21, %v54_v14  ;;  %v245_v52 = vmul.f32 %v180_v20, %v61_v42  ;;  %v278_v3 = vrot.slane %v277_v53, 2  ;;  %v271_v39 = vrot.slane %v270_v19, 1 }
  0xcf   :  { %v284_v27 = vadd.f32 %v283_v22, %v238_v23  ;;  %v301_v7 = vadd.f32 %v300_v38, %v245_v52  ;;  %v279_v20 = vadd.f32 %v278_v3, %v277_v53 }
  0xd0   :  { %v214_v35 = vpop.permute.xlu1 %213  ;;  %v210_v36 = vpop.permute.xlu0 %209 }
  0xd1   :  { %v285_v43 = vrot.slane %v284_v27, 4  ;;  %v252_v61 = vmul.f32 %v214_v35, %v68_v48  ;;  %v251_v62 = vmul.f32 %v210_v36, %v67_v49  ;;  %v280_v40 = vrot.slane %v279_v20, 1 }
  0xd2   :  { %v272_v49 = vadd.f32 %v271_v39, %v270_v19 }
  0xd3   :  { %v286_v60 = vadd.f32 %v285_v43, %v284_v27  ;;  %v318_v9 = vadd.f32 %v252_v61, %v251_v62  ;;  %v281_v51 = vadd.f32 %v280_v40, %v279_v20 }
  0xd4   :  { %v199_v54 = vpop.permute.xlu1 %198  ;;  %v165_v55 = vpop.permute.xlu0 %164 }
  0xd5   :  { %v242_v58 = vmul.f32 %v165_v55, %v58_v44  ;;  %v249_v4 = vmul.f32 %v199_v54, %v65_v57  ;;  %v287_v14 = vrot.slane %v286_v60, 2  ;;  %v262_v44 = vrot.slane %v261_v30, 1 }
  0xd7   :  { %v293_v1 = vadd.f32 %v292_v56, %v242_v58  ;;  %v310_v21 = vadd.f32 %v309_v13, %v249_v4  ;;  %v288_v31 = vadd.f32 %v287_v14, %v286_v60  ;;  %v263_v55 = vadd.f32 %v262_v44, %v261_v30 }
  0xd8   :  { %v218_v5 = vpop.permute.xlu1 %217  ;;  %v184_v6 = vpop.permute.xlu0 %183  ;;  %v328_v60 = vand.u32 127, %v71_v0 }
  0xd9   :  { %v294_v10 = vrot.slane %v293_v1, 4  ;;  %v253_v11 = vmul.f32 %v218_v5, %v69_v37  ;;  %v246_v8 = vmul.f32 %v184_v6, %v62_v63  ;;  %v289_v45 = vrot.slane %v288_v31, 1 }
  0xda   :  { %v339_v58 = vsel %vm338_vm0, %v272_v49, %v263_v55  ;;  %vm329_vm7 = vcmp.lt.s32.totalorder %v328_v60, 8 }
  0xdb   :  { %v295_v17 = vadd.f32 %v294_v10, %v293_v1  ;;  %v302_v18 = vadd.f32 %v301_v7, %v246_v8  ;;  %v319_v22 = vadd.f32 %v318_v9, %v253_v11  ;;  %v290_v56 = vadd.f32 %v289_v45, %v288_v31 }
  0xdc   :  { %v222_v23 = vpop.permute.xlu1 %221  ;;  %v203_v24 = vpop.permute.xlu0 %202  ;;  %v341_v37 = vsel %vm340_vm1, %v281_v51, %v339_v58 }
  0xdd   :  { %v296_v25 = vrot.slane %v295_v17, 2  ;;  %v303_v26 = vrot.slane %v302_v18, 4  ;;  %v254_v27 = vmul.f32 %v222_v23, %v70_v15  ;;  %v250_v28 = vmul.f32 %v203_v24, %v66_v16 }
  0xde   :  { %v343_v63 = vsel %vm342_vm2, %v290_v56, %v341_v37 }
  0xdf   :  { %v297_v33 = vadd.f32 %v296_v25, %v295_v17  ;;  %v304_v34 = vadd.f32 %v303_v26, %v302_v18  ;;  %v320_v35 = vadd.f32 %v319_v22, %v254_v27  ;;  %v311_v36 = vadd.f32 %v310_v21, %v250_v28 }
  0xe1   :  { %v305_v41 = vrot.slane %v304_v34, 2  ;;  %v321_v42 = vrot.slane %v320_v35, 4  ;;  %v312_v43 = vrot.slane %v311_v36, 4  ;;  %v298_v46 = vrot.slane %v297_v33, 1 }
  0xe3   :  { %v306_v32 = vadd.f32 %v305_v41, %v304_v34  ;;  %v322_v47 = vadd.f32 %v321_v42, %v320_v35  ;;  %v313_v48 = vadd.f32 %v312_v43, %v311_v36  ;;  %v299_v29 = vadd.f32 %v298_v46, %v297_v33 }
  0xe5   :  { %v307_v50 = vrot.slane %v306_v32, 1  ;;  %v323_v53 = vrot.slane %v322_v47, 2  ;;  %v314_v54 = vrot.slane %v313_v48, 2  ;;  %v345_v2 = vsel %vm344_vm3, %v299_v29, %v343_v63 }
  0xe7   :  { %v324_v52 = vadd.f32 %v323_v53, %v322_v47  ;;  %v315_v57 = vadd.f32 %v314_v54, %v313_v48  ;;  %v308_v59 = vadd.f32 %v307_v50, %v306_v32 }
  0xe9   :  { %v316_v61 = vrot.slane %v315_v57, 1  ;;  %v325_v62 = vrot.slane %v324_v52, 1  ;;  %v347_v3 = vsel %vm346_vm4, %v308_v59, %v345_v2 }
  0xeb   :  { %v317_v38 = vadd.f32 %v316_v61, %v315_v57  ;;  %v326_v1 = vadd.f32 %v325_v62, %v324_v52 }
  0xed   :  { %v349_v4 = vsel %vm348_vm5, %v317_v38, %v347_v3 }
  0xee   :  { %v351_v5 = vsel %vm350_vm6, %v326_v1, %v349_v4 }
  0xef   :  { %v353_v6 = vsel %vm329_vm7, %v351_v5, -1e+30 }
  0xf0   :  { %354 = vmax.xlane.f32.xlu0 %v353_v6 }
 0x17d   :  { %v355_v7 = vpop.xlane.xlu0 %354 }
 0x17e   :  { %v356_v10 = vsub.f32 %v353_v6, %v355_v7 }
 0x180   :  { %v357_v0 = vmul.f32 1.442695, %v356_v10 }
 0x182   :  { %385 = vpow2.f32 %v357_v0 }
 0x18c   :  { %v386_v11 = vpop.eup %385 }
 0x18d   :  { %359 = vadd.xlane.f32.xlu1 %v386_v11 }
 0x21a   :  { %v360_v8 = vpop.xlane.xlu1 %359 }
 0x21b   :  { %387 = vrcp.f32 %v360_v8 }
 0x225   :  { %v388_v12 = vpop.eup %387 }
 0x226   :  { %v362_v13 = vmul.f32 %v388_v12, %v386_v11 }
 0x228   :  { %363 = vst [vmem:[#allocation7] sm:$0xff] %v362_v13 }
 0x229   :  { %444 = shalt.err (!%p441_p6)
}
 0x22a   :  { %s445_s10 = scalar_lea.hbm %s537_s2, 128 }
 0x22b   :  { %p446_p7 = scmp.ne.s32.totalorder %s537_s2, %s445_s10  ;;  %p449_p8 = scmp.lt.u32.totalorder %s445_s10, %s537_s2 }
 0x22d   :  { %p451_p9 = pnand %p449_p8, %p446_p7 }
 0x22f   :  { %454 = shalt.err (!%p451_p9)
}
 0x230   :  { %373 = dma.vmem_to_hbm [thread:$0]  %s371_s6, 128, %s537_s2, [#allocation4]  }
 0x231   :  { %459 = dma.done.wait [#allocation4], 128  }
 0x232   :  { %460 = vsyncadd [#allocation4], 4294967168 }
 0x233   :  { %377 = vsyncpa [#allocation3], 1 }
 0x234   :  { %378 = vsyncpa [#allocation6], 1 }
 0x235   :  { %379 = vsyncpa [#allocation4], 1 }

</bundles_post_ra>
